<compile_context>
chip_gen: v5e
topology: v5e:2x2
jax: 0.10.0
libtpu: 0.0.40
codegen_flags: <defaults>
</compile_context>

<pallas_src>
import functools

import jax
import jax.numpy as jnp
from jax.experimental import pallas as pl
from jax.experimental.pallas import tpu as pltpu


_VMEM_LIMIT = 32 * 1024 * 1024  # explicit scoped-VMEM limit, safe on v5e/v6e/v7x


def _pick_tile(hw, c_eff, itemsize=4, budget=2 << 20):
    """Largest multiple-of-128 divisor of hw such that a (c_eff, T) block of
    `itemsize`-byte elements stays within `budget` bytes. Falls back to the
    full axis when hw is not a multiple of 128 (full-dim blocks always satisfy
    the (8,128) rule). `c_eff` should already include any sublane/lane padding
    the kernel will incur (e.g. transpose intermediates)."""
    if hw % 128 != 0:
        return hw
    cap = max(128, (budget // max(c_eff * itemsize, 1)) // 128 * 128)
    t = min(hw, cap)
    while hw % t != 0:
        t -= 128
    return t


# ----------------------------------------------------------------------------
# Permute kernels (the concrete ops of PermuteToFrom.forward)
# ----------------------------------------------------------------------------
def _nchw_to_nhwc_kernel(x_ref, o_ref):
    # x_ref: (1, C, T) block of the (N, C, H*W) view (lane-dense input).
    x = x_ref[0]                                   # (C, T)
    c, t = x.shape
    cp = -(-c // 8) * 8                            # pad channels to a sublane
    if cp != c:                                    # multiple -> well-supported
        x = jnp.concatenate(                       # (8k, 128m) transpose shape
            [x, jnp.zeros((cp - c, t), x.dtype)], axis=0)
    y = x.T                                        # (T, cp)
    o_ref[0] = y[:, :c]                            # (T, C) -> NHWC block


def _nhwc_to_nchw_kernel(x_ref, o_ref):
    # x_ref: (1, T, C) block of the (N, H*W, C) view.
    x = x_ref[0]                                   # (T, C)
    t, c = x.shape
    cp = -(-c // 128) * 128                        # pad lanes to 128 for a
    if cp != c:                                    # well-supported transpose
        x = jnp.concatenate(
            [x, jnp.zeros((t, cp - c), x.dtype)], axis=1)
    y = x.T                                        # (cp, T)
    o_ref[0] = y[:c, :]                            # (C, T) lane-dense output


def nchw_to_nhwc(x):
    n, c, h, w = x.shape
    hw = h * w
    # Transpose intermediate occupies full (8,128) lane tiles -> size it with
    # an effective channel count of at least 128 lanes.
    t = _pick_tile(hw, max(c, 128), jnp.dtype(x.dtype).itemsize)
    s = hw // t
    xf = x.reshape(n, c, hw)                       # free reshape outside kernel
    out = pl.pallas_call(
        _nchw_to_nhwc_kernel,
        out_shape=jax.ShapeDtypeStruct((n, hw, c), x.dtype),
        grid_spec=pltpu.PrefetchScalarGridSpec(
            num_scalar_prefetch=0,
            grid=(n, s),
            in_specs=[pl.BlockSpec((1, c, t), lambda ni, si: (ni, 0, si))],
            out_specs=pl.BlockSpec((1, t, c), lambda ni, si: (ni, si, 0)),
        ),
        compiler_params=pltpu.CompilerParams(
            dimension_semantics=("parallel", "parallel"),
            vmem_limit_bytes=_VMEM_LIMIT),
    )(xf)
    return out.reshape(n, h, w, c)


def nhwc_to_nchw(x):
    n, h, w, c = x.shape
    hw = h * w
    t = _pick_tile(hw, max(c, 128), jnp.dtype(x.dtype).itemsize)
    s = hw // t
    xf = x.reshape(n, hw, c)
    out = pl.pallas_call(
        _nhwc_to_nchw_kernel,
        out_shape=jax.ShapeDtypeStruct((n, c, hw), x.dtype),
        grid_spec=pltpu.PrefetchScalarGridSpec(
            num_scalar_prefetch=0,
            grid=(n, s),
            in_specs=[pl.BlockSpec((1, t, c), lambda ni, si: (ni, si, 0))],
            out_specs=pl.BlockSpec((1, c, t), lambda ni, si: (ni, 0, si)),
        ),
        compiler_params=pltpu.CompilerParams(
            dimension_semantics=("parallel", "parallel"),
            vmem_limit_bytes=_VMEM_LIMIT),
    )(xf)
    return out.reshape(n, c, h, w)


def permute_to_from(fn, x):
    """Pallas equivalent of PermuteToFrom.forward for an arbitrary JAX `fn`
    with the PyTorch contract fn(nhwc) -> (out_nhwc, *aux, loss)."""
    x_nhwc = nchw_to_nhwc(x)
    results = fn(x_nhwc)
    out_nhwc, loss = results[0], results[-1]
    out = nhwc_to_nchw(out_nhwc)
    return out, loss


# ----------------------------------------------------------------------------
# Fused fast path: permutes done logically inside one kernel
# ----------------------------------------------------------------------------
def _fused_norm_kernel(x_ref, g_ref, b_ref, o_ref, loss_ref, *, eps):
    # x_ref: (1, C, T) block of the (N, C, H*W) view. Channels on sublanes,
    # flattened spatial on lanes (lane-dense in AND out). The NHWC permute is
    # purely logical: the "channel-last" axis of fn is simply axis 0 here.
    x = x_ref[0].astype(jnp.float32)               # (C, T), f32 in-register
    c = x.shape[0]
    # Single-pass stats over the channel axis.
    s1 = jnp.sum(x, axis=0, keepdims=True)         # (1, T)
    s2 = jnp.sum(x * x, axis=0, keepdims=True)     # (1, T)
    mean = s1 * (1.0 / c)
    var = jnp.maximum(s2 * (1.0 / c) - mean * mean, 0.0)
    # eps added to std (not var) to match the reference fn exactly; the divide
    # goes to the EUP via approx reciprocal instead of the VALU.
    inv = pl.reciprocal(jnp.sqrt(var) + eps, approx=True)
    g = g_ref[...].astype(jnp.float32)             # (C, 1) slim param block
    b = b_ref[...].astype(jnp.float32)             # (C, 1)
    y = (x - mean) * inv * g + b
    o_ref[0] = y.astype(o_ref.dtype)
    # Per-block partial of the aux loss sum(x^2); finished outside the kernel.
    part = jnp.sum(s2, axis=1, keepdims=True)      # (1, 1)
    loss_ref[...] = part.reshape(1, 1, 1, 1)


def permute_to_from_fused(x, g, b, eps=1e-5):
    """Fused PermuteToFrom(stand-in fn): equivalent to
    permute_to_from(partial(example_channellast_fn, g=g, b=b, eps=eps), x)
    but with zero HBM traffic for the NHWC intermediate."""
    n, c, h, w = x.shape
    hw = h * w
    # No transpose intermediate here; only the f32 working set (sublane-padded
    # channels) bounds the tile.
    t = _pick_tile(hw, max(c, 8), 4)
    s = hw // t
    xf = x.reshape(n, c, hw)
    g2 = g.reshape(c, 1).astype(jnp.float32)
    b2 = b.reshape(c, 1).astype(jnp.float32)
    kernel = functools.partial(_fused_norm_kernel, eps=eps)
    out, loss_parts = pl.pallas_call(
        kernel,
        out_shape=(jax.ShapeDtypeStruct((n, c, hw), x.dtype),
                   jax.ShapeDtypeStruct((n, s, 1, 1), jnp.float32)),
        grid_spec=pltpu.PrefetchScalarGridSpec(
            num_scalar_prefetch=0,
            grid=(n, s),
            in_specs=[pl.BlockSpec((1, c, t), lambda ni, si: (ni, 0, si)),
                      pl.BlockSpec((c, 1), lambda ni, si: (0, 0)),
                      pl.BlockSpec((c, 1), lambda ni, si: (0, 0))],
            out_specs=[pl.BlockSpec((1, c, t), lambda ni, si: (ni, 0, si)),
                       pl.BlockSpec((1, 1, 1, 1),
                                    lambda ni, si: (ni, si, 0, 0))],
        ),
        compiler_params=pltpu.CompilerParams(
            dimension_semantics=("parallel", "parallel"),
            vmem_limit_bytes=_VMEM_LIMIT),
    )(xf, g2, b2)
    loss = jnp.sum(loss_parts) / (n * c * hw)
    return out.reshape(n, c, h, w), loss


# ----------------------------------------------------------------------------
# Stand-in `fn` and pure-JAX reference of the module
# ----------------------------------------------------------------------------
def example_channellast_fn(x_nhwc, g, b, eps=1e-5):
    # TODO(synk): `fn` is an injected submodule in the PyTorch code (e.g.
    # VectorQuantize); this deterministic channel-last stand-in only fixes the
    # (out, *aux, loss) return contract for the demo.
    xf = x_nhwc.astype(jnp.float32)
    mean = jnp.mean(xf, axis=-1, keepdims=True)
    var = jnp.mean(jnp.square(xf - mean), axis=-1, keepdims=True)
    out = (xf - mean) / (jnp.sqrt(var) + eps) * g + b
    aux = mean
    loss = jnp.mean(jnp.square(xf))
    return out.astype(x_nhwc.dtype), aux, loss


def permute_to_from_ref(fn, x):
    """Pure-JAX reference of PermuteToFrom.forward."""
    x_nhwc = jnp.transpose(x, (0, 2, 3, 1))
    res = fn(x_nhwc)
    out_nhwc, loss = res[0], res[-1]
    return jnp.transpose(out_nhwc, (0, 3, 1, 2)), loss


if __name__ == "__main__":
    key = jax.random.PRNGKey(0)
    N, C, H, W = 2, 4, 16, 16

    x = jax.random.normal(key, (N, C, H, W), dtype=jnp.float32)
    g = jnp.ones((C,), dtype=jnp.float32)    # deterministic stand-in fn params
    b = jnp.zeros((C,), dtype=jnp.float32)

    fn = functools.partial(example_channellast_fn, g=g, b=b)

    # Generic path: Pallas permutes + arbitrary JAX fn.
    out, loss = permute_to_from(fn, x)
    out = jax.block_until_ready(out)

    # Fused path: single kernel, permutes are logical.
    out_f, loss_f = permute_to_from_fused(x, g, b)
    out_f = jax.block_until_ready(out_f)

    out_ref, loss_ref = permute_to_from_ref(fn, x)

    assert out.shape == (N, C, H, W)
    assert jnp.allclose(out, out_ref, atol=1e-5, rtol=1e-5), "generic path mismatch"
    assert jnp.allclose(loss, loss_ref, atol=1e-6, rtol=1e-6), "generic loss mismatch"
    # Fused path uses approx reciprocal (EUP) + single-pass variance -> looser tol.
    assert jnp.allclose(out_f, out_ref, atol=5e-3, rtol=5e-3), "fused path mismatch"
    assert jnp.allclose(loss_f, loss_ref, atol=1e-5, rtol=1e-5), "fused loss mismatch"

    print("KERNEL_OK")
</pallas_src>

<mosaic_0001>
module attributes {stable_mosaic.version = 11 : i64} {
  func.func @_nchw_to_nhwc_kernel(%arg0: i32, %arg1: i32, %arg2: memref<1x4x256xf32, #tpu.memory_space<vmem>>, %arg3: memref<1x256x4xf32, #tpu.memory_space<vmem>>) attributes {dimension_semantics = [#tpu.dimension_semantics<parallel>, #tpu.dimension_semantics<parallel>], iteration_bounds = array<i64: 2, 1>, scalar_prefetch = 0 : i64, scratch_operands = 0 : i64, tpu.core_type = #tpu.core_type<tc>, window_params = [{transform_indices = @transform_0, window_bounds = array<i64: 1, 4, 256>}, {transform_indices = @transform_1, window_bounds = array<i64: 1, 256, 4>}]} {
    %c0 = arith.constant 0 : index
    %c0_0 = arith.constant 0 : index
    %c0_1 = arith.constant 0 : index
    %0 = vector.load %arg2[%c0, %c0_0, %c0_1] : memref<1x4x256xf32, #tpu.memory_space<vmem>>, vector<1x4x256xf32>
    %1 = vector.shape_cast %0 : vector<1x4x256xf32> to vector<4x256xf32>
    %cst = arith.constant 0.000000e+00 : f32
    %2 = vector.broadcast %cst : f32 to vector<4x256xf32>
    %3 = tpu.concatenate %1, %2 in 0 : vector<4x256xf32>, vector<4x256xf32> -> vector<8x256xf32>
    %4 = tpu.transpose %3, [1, 0] : vector<8x256xf32> -> vector<256x8xf32>
    %5 = vector.extract_strided_slice %4 {offsets = [0, 0], sizes = [256, 4], strides = [1, 1]} : vector<256x8xf32> to vector<256x4xf32>
    %c0_2 = arith.constant 0 : index
    %c0_3 = arith.constant 0 : index
    %c0_4 = arith.constant 0 : index
    %6 = vector.load %arg3[%c0_2, %c0_3, %c0_4] : memref<1x256x4xf32, #tpu.memory_space<vmem>>, vector<1x256x4xf32>
    %7 = vector.shape_cast %6 : vector<1x256x4xf32> to vector<256x4xf32>
    %8 = vector.shape_cast %5 : vector<256x4xf32> to vector<1x256x4xf32>
    tpu.vector_store %arg3[%c0_2, %c0_3, %c0_4], %8 {strides = array<i32>} : memref<1x256x4xf32, #tpu.memory_space<vmem>>, vector<1x256x4xf32>,
    return
  }
  func.func @transform_0(%arg0: i32, %arg1: i32) -> (i32, i32, i32) {
    %c0_i32 = arith.constant 0 : i32
    %c0_i32_0 = arith.constant 0 : i32
    return %arg0, %c0_i32, %arg1 : i32, i32, i32
  }
  func.func @transform_1(%arg0: i32, %arg1: i32) -> (i32, i32, i32) {
    %c0_i32 = arith.constant 0 : i32
    %c0_i32_0 = arith.constant 0 : i32
    return %arg0, %arg1, %c0_i32 : i32, i32, i32
  }
}

</mosaic_0001>

<bundles_post_ra>
// kernel: tpu_custom_call.1
= control target key start
LH: loop header
LB: loop body
LE: loop exit
PB: predicated region body
PF: predicated region fallthrough
CT: control target
= control target key end

     0   :  { %6 = vsyncpa [#allocation3], 0  ;;  %s684_s0 = inlined_call_operand.hbm [shape: f32[2,4,256], index: 0, kind: input, shape index: {}]   ;;  %s685_s1 = inlined_call_operand.vmem [shape: f32[2,256,4], index: 1, kind: output, shape index: {}]  }
   0x1   :  { %8 = vsyncpa [#allocation3 + $0x1], 0  ;;  %s530_s6 = smov 0   ;;  %s532_s7 = smov 0  }
   0x2   :  { %s534_s8 = smov 0   ;;  %s536_s9 = smov 0  }
   0x3   :  { %s538_s10 = smov 0   ;;  %s540_s11 = smov 0  }
   0x4 LB: > { %s367_s12 = sadd.s32 4294967295, %s518_s11   ;;  %s26_s13 = sadd.s32 1, %s514_s10  ;;  %s518_s11 = sphi %s540_s11, %s14_s11   ;;  %s514_s10 = sphi %s538_s10, %s692_s10   ;;  %s510_s9 = sphi %s536_s9, %s691_s9   ;;  %s506_s8 = sphi %s534_s8, %s690_s8   ;;  %s502_s7 = sphi %s532_s7, %s689_s7   ;;  %s498_s6 = sphi %s530_s6, %s688_s6  }
   0x5   : > { %p28_p0 = scmp.ge.s32.totalorder %s26_s13, 2  ;;  %s35_s14 = sadd.s32 1, %s506_s8 }
   0x6   : > { %p42_p1 = scmp.ne.s32.totalorder %s506_s8, %s502_s7  ;;  %p43_p2 = scmp.eq.s32.totalorder %s518_s11, 0 }
   0x7   : > { %s694_s13 = smov (%p28_p0, %s26_s13), 0  ;;  %p48_p4 = scmp.ne.s32.totalorder %s502_s7, %s498_s6 }
   0x8   : > { %p566_p3 = por %p43_p2, %p42_p1  ;;  %s30_s16 = ssub.s32 %s514_s10, %s694_s13 }
   0x9   : > { %p49_p5 = scmp.eq.s32.totalorder %s367_s12, 0  ;;  %p33_p6 = scmp.eq.s32.totalorder %s30_s16, 0 }
   0xa   : > { %p388_p8 = scmp.lt.s32.totalorder %s518_s11, 2  ;;  %s100_s19 = sand.u32 1, %s506_s8  }
   0xb   : > { %p573_p7 = por %p49_p5, %p48_p4  ;;  %s380_s20 = sshll.u32 %s514_s10, 3 }
   0xc   : > { %s579_s18 = scalar_select %p33_p6, %s506_s8, %s35_s14  }
   0xd   : > { %s371_s21 = sshll.u32 %s100_s19, 3  ;;  %s111_s24 = scalar_lea.hbm %s684_s0, %s380_s20 }
   0xe   : > { %s113_s25 = sshll.u32 %s111_s24, 4  ;;  %s104_s26 = scalar_lea.vmem [#allocation2], %s371_s21  ;;  %s114_s25 = int_to_ptr.hbm [resolvable:$true] %s113_s25 }
   0xf   : > { %s115_s27 = sshll.u32 %s104_s26, 4  ;;  %p385_p9 = pnand %p388_p8, %p566_p3  ;;  %s116_s27 = int_to_ptr.vmem [resolvable:$true] %s115_s27 }
  0x10   : > { %p374_p10 = scmp.ge.s32.totalorder %s518_s11, 1  ;;  %p120_p11 = scmp.lt.s32.totalorder %s518_s11, 3 }
  0x11   : > { %s101_s28 = scalar_lea.sflag [#allocation3], %s100_s19 }
  0x12   : > { %387 = dma.hbm_to_vmem [thread:$0]  (!%p385_p9), %s114_s25, 128, %s116_s27, %s101_s28  }
  0x13   : > { %p121_p12 = pnand %p374_p10, %p120_p11 }
  0x14   : > { %s126_s29 = sand.u32 (!%p121_p12), 1, %s502_s7  }
  0x15   : > { %124 = sbr.rel (%p121_p12) target bundleno = 451 (0x1c3), region = 24  ;;  %s375_s30 = sshll.u32 (!%p121_p12), %s126_s29, 3 }
  0x16   : > { %s127_s2 = scalar_lea.sflag (!%p121_p12), [#allocation3], %s126_s29  ;;  %s130_s3 = scalar_lea.vmem (!%p121_p12), [#allocation2], %s375_s30 }
  0x1a   : > { %493 = dma.done.wait (%p573_p7), %s127_s2, 128  }
  0x1b   : > { %495 = vsyncadd (%p573_p7), %s127_s2, 4294967168  ;;  %v165_v0 = vld [vmem:[%s130_s3] sm:$0xff]  ;;  %vm172_vm0 = vcmask 1043456   ;;  %p156_p13 = scmp.lt.s32.totalorder %s510_s9, 1  ;;  %vm239_vm1 = vcmask 31744  }
  0x1c   : > { %167 = vst [vmem:[#allocation1] ss:$2 sm:$0xff] %v165_v0 }
  0x1d   : > { %s696_s9 = smov (!%p156_p13, %s510_s9), 1 }
  0x1e   : > { %s381_s4 = sshll.u32 %s696_s9, 8 }
  0x1f   : > { %s600_s12 = scalar_lea.vmem %s685_s1, %s381_s4 }
  0x23   : > { %v168_v1 = vld.sshfl [vmem:[#allocation1] sm:$0xff pattern:$0x75316420]  ;;  %v169_v3 = vld.sshfl [vmem:[#allocation1 + $0x8] sm:$0xff pattern:$0x75316420] }
  0x24   : > { %v173_v2 = vsel %vm172_vm0, %v168_v1, 0.0  ;;  %v174_v4 = vsel %vm172_vm0, %v169_v3, 0.0 }
  0x25   : > { %175 = vxpose.xlu0.b32.start.end [1/1] (short) %v173_v2, 128 }
  0xa5   : > { %207 = vxpose.xlu0.b32.start.end [1/1] (short) %v174_v4, 128 }
  0xc9   : > { %v191_v5 = vpop.trf.xlu0 }
  0xca   : > { %240 = vst.msk [vmem:[%s600_s12] sm:$0xff] %vm239_vm1, %v191_v5 }
  0xd1   : > { %v192_v6 = vpop.trf.xlu0 }
  0xd2   : > { %241 = vst.msk [vmem:[%s600_s12 + $0x8] sm:$0xff] %vm239_vm1, %v192_v6 }
  0xd9   : > { %v193_v7 = vpop.trf.xlu0 }
  0xda   : > { %242 = vst.msk [vmem:[%s600_s12 + $0x10] sm:$0xff] %vm239_vm1, %v193_v7 }
  0xe1   : > { %v194_v8 = vpop.trf.xlu0 }
  0xe2   : > { %243 = vst.msk [vmem:[%s600_s12 + $0x18] sm:$0xff] %vm239_vm1, %v194_v8 }
  0xe9   : > { %v195_v9 = vpop.trf.xlu0 }
  0xea   : > { %244 = vst.msk [vmem:[%s600_s12 + $0x20] sm:$0xff] %vm239_vm1, %v195_v9 }
  0xf1   : > { %v196_v10 = vpop.trf.xlu0 }
  0xf2   : > { %245 = vst.msk [vmem:[%s600_s12 + $0x28] sm:$0xff] %vm239_vm1, %v196_v10 }
  0xf9   : > { %v197_v11 = vpop.trf.xlu0 }
  0xfa   : > { %246 = vst.msk [vmem:[%s600_s12 + $0x30] sm:$0xff] %vm239_vm1, %v197_v11 }
 0x101   : > { %v198_v12 = vpop.trf.xlu0 }
 0x102   : > { %247 = vst.msk [vmem:[%s600_s12 + $0x38] sm:$0xff] %vm239_vm1, %v198_v12 }
 0x109   : > { %v199_v13 = vpop.trf.xlu0 }
 0x10a   : > { %248 = vst.msk [vmem:[%s600_s12 + $0x40] sm:$0xff] %vm239_vm1, %v199_v13 }
 0x111   : > { %v200_v14 = vpop.trf.xlu0 }
 0x112   : > { %249 = vst.msk [vmem:[%s600_s12 + $0x48] sm:$0xff] %vm239_vm1, %v200_v14 }
 0x119   : > { %v201_v15 = vpop.trf.xlu0 }
 0x11a   : > { %250 = vst.msk [vmem:[%s600_s12 + $0x50] sm:$0xff] %vm239_vm1, %v201_v15 }
 0x121   : > { %v202_v16 = vpop.trf.xlu0 }
 0x122   : > { %251 = vst.msk [vmem:[%s600_s12 + $0x58] sm:$0xff] %vm239_vm1, %v202_v16 }
 0x129   : > { %v203_v17 = vpop.trf.xlu0 }
 0x12a   : > { %252 = vst.msk [vmem:[%s600_s12 + $0x60] sm:$0xff] %vm239_vm1, %v203_v17 }
 0x131   : > { %v204_v18 = vpop.trf.xlu0 }
 0x132   : > { %253 = vst.msk [vmem:[%s600_s12 + $0x68] sm:$0xff] %vm239_vm1, %v204_v18 }
 0x139   : > { %v205_v19 = vpop.trf.xlu0 }
 0x13a   : > { %254 = vst.msk [vmem:[%s600_s12 + $0x70] sm:$0xff] %vm239_vm1, %v205_v19 }
 0x141   : > { %v206_v20 = vpop.trf.xlu0 }
 0x142   : > { %255 = vst.msk [vmem:[%s600_s12 + $0x78] sm:$0xff] %vm239_vm1, %v206_v20 }
 0x149   : > { %v223_v21 = vpop.trf.xlu0 }
 0x14a   : > { %256 = vst.msk [vmem:[%s600_s12 + $0x80] sm:$0xff] %vm239_vm1, %v223_v21 }
 0x151   : > { %v224_v22 = vpop.trf.xlu0 }
 0x152   : > { %257 = vst.msk [vmem:[%s600_s12 + $0x88] sm:$0xff] %vm239_vm1, %v224_v22 }
 0x159   : > { %v225_v23 = vpop.trf.xlu0 }
 0x15a   : > { %258 = vst.msk [vmem:[%s600_s12 + $0x90] sm:$0xff] %vm239_vm1, %v225_v23 }
 0x161   : > { %v226_v24 = vpop.trf.xlu0 }
 0x162   : > { %259 = vst.msk [vmem:[%s600_s12 + $0x98] sm:$0xff] %vm239_vm1, %v226_v24 }
 0x169   : > { %v227_v25 = vpop.trf.xlu0 }
 0x16a   : > { %260 = vst.msk [vmem:[%s600_s12 + $0xa0] sm:$0xff] %vm239_vm1, %v227_v25 }
 0x171   : > { %v228_v26 = vpop.trf.xlu0 }
 0x172   : > { %261 = vst.msk [vmem:[%s600_s12 + $0xa8] sm:$0xff] %vm239_vm1, %v228_v26 }
 0x179   : > { %v229_v27 = vpop.trf.xlu0 }
 0x17a   : > { %262 = vst.msk [vmem:[%s600_s12 + $0xb0] sm:$0xff] %vm239_vm1, %v229_v27 }
 0x181   : > { %v230_v28 = vpop.trf.xlu0 }
 0x182   : > { %263 = vst.msk [vmem:[%s600_s12 + $0xb8] sm:$0xff] %vm239_vm1, %v230_v28 }
 0x189   : > { %v231_v29 = vpop.trf.xlu0 }
 0x18a   : > { %264 = vst.msk [vmem:[%s600_s12 + $0xc0] sm:$0xff] %vm239_vm1, %v231_v29 }
 0x191   : > { %v232_v30 = vpop.trf.xlu0 }
 0x192   : > { %265 = vst.msk [vmem:[%s600_s12 + $0xc8] sm:$0xff] %vm239_vm1, %v232_v30 }
 0x199   : > { %v233_v31 = vpop.trf.xlu0 }
 0x19a   : > { %266 = vst.msk [vmem:[%s600_s12 + $0xd0] sm:$0xff] %vm239_vm1, %v233_v31 }
 0x1a1   : > { %v234_v32 = vpop.trf.xlu0 }
 0x1a2   : > { %267 = vst.msk [vmem:[%s600_s12 + $0xd8] sm:$0xff] %vm239_vm1, %v234_v32 }
 0x1a9   : > { %v235_v33 = vpop.trf.xlu0 }
 0x1aa   : > { %268 = vst.msk [vmem:[%s600_s12 + $0xe0] sm:$0xff] %vm239_vm1, %v235_v33 }
 0x1b1   : > { %v236_v34 = vpop.trf.xlu0 }
 0x1b2   : > { %269 = vst.msk [vmem:[%s600_s12 + $0xe8] sm:$0xff] %vm239_vm1, %v236_v34 }
 0x1b9   : > { %v237_v35 = vpop.trf.xlu0 }
 0x1ba   : > { %270 = vst.msk [vmem:[%s600_s12 + $0xf0] sm:$0xff] %vm239_vm1, %v237_v35 }
 0x1c1   : > { %v238_v36 = vpop.trf.xlu0 }
 0x1c2   : > { %271 = vst.msk [vmem:[%s600_s12 + $0xf8] sm:$0xff] %vm239_vm1, %v238_v36 }
 0x1c3 PF: > { %s14_s11 = sadd.s32 1, %s518_s11   ;;  %s688_s6 = smov %s502_s7 }
 0x1c4   : > { %p11_p0 = scmp.ge.s32.totalorder %s14_s11, 4   ;;  %s689_s7 = smov %s506_s8 }
 0x1c5   : > { %s690_s8 = smov %s579_s18  ;;  %s691_s9 = smov %s514_s10 }
 0x1c6   : > { %s692_s10 = smov %s694_s13  ;;  %13 = sbr.rel (!%p11_p0) target bundleno = 4 (0x4), region = 64 }
 0x1cb   :  { %302 = vsyncpa [#allocation3], 1 }
 0x1cc   :  { %304 = vsyncpa [#allocation3 + $0x1], 1 }

</bundles_post_ra>
